<compile_context>
chip_gen: v6e
topology: v6e:2x2x1
jax: 0.10.0
libtpu: 0.0.40
codegen_flags: <defaults>
</compile_context>

<pallas_src>
import functools

import jax
import jax.numpy as jnp
from jax.experimental import pallas as pl
from jax.experimental.pallas import tpu as pltpu

_BN_EPS = 1e-5


@functools.lru_cache(maxsize=1)
def _vmem_limit_bytes():
    # Generation-aware scoped-VMEM limit (v5e/v6e: 128 MiB phys, v7x: 64 MiB).
    try:
        cap = int(pltpu.get_tpu_info().vmem_capacity_bytes)
    except Exception:
        cap = 64 * 1024 * 1024
    return max(16 * 1024 * 1024, min(cap - 16 * 1024 * 1024, 96 * 1024 * 1024))


def _compiler_params():
    return pltpu.CompilerParams(dimension_semantics=("parallel",),
                                vmem_limit_bytes=_vmem_limit_bytes())


# ----------------------------------------------------------------------------
# Fused conv block kernel:
#   [deferred BN scale/shift (+ReLU) of the PREVIOUS block applied to input]
#   -> 3x3 conv (stride 1, "same" zero pad) via 3 banded matmuls + bias
#   -> [per-image partial BN stats emitted]  [ReLU]  [sigmoid]
# ----------------------------------------------------------------------------
def _conv3x3_kernel(*refs, H, WCout, apply_in, in_relu, out_relu,
                    out_sigmoid, emit_stats):
    it = iter(refs)
    x_ref = next(it)          # (1, H, W*Cin)        bf16  lane-flat input rows
    wb_ref = next(it)         # (3, W*Cin, W*Cout)   bf16  banded weights (per ky)
    brow_ref = next(it)       # (1, W*Cout)          f32   bias tiled over W
    if apply_in:
        scale_ref = next(it)  # (1, W*Cin)           f32   deferred BN scale
        shift_ref = next(it)  # (1, W*Cin)           f32   deferred BN shift
    y_ref = next(it)          # (1, H, W*Cout)
    if emit_stats:
        stats_ref = next(it)  # (1, 2, W*Cout)       f32   (sum, sum_sq) over H

    x = x_ref[0]                                        # (H, W*Cin) bf16
    if apply_in:
        xf = x.astype(jnp.float32) * scale_ref[...] + shift_ref[...]
        if in_relu:
            xf = jnp.maximum(xf, 0.0)
        x = xf.astype(jnp.bfloat16)

    # Three lane-dense MXU matmuls; width padding is baked into the bands.
    d0 = jnp.dot(x, wb_ref[0], preferred_element_type=jnp.float32)
    d1 = jnp.dot(x, wb_ref[1], preferred_element_type=jnp.float32)
    d2 = jnp.dot(x, wb_ref[2], preferred_element_type=jnp.float32)

    # Height ("same") padding: output row h = d0[h-1] + d1[h] + d2[h+1].
    zrow = jnp.zeros((1, WCout), jnp.float32)
    acc = (d1
           + jnp.concatenate([zrow, d0[:H - 1]], axis=0)
           + jnp.concatenate([d2[1:], zrow], axis=0))
    acc = acc + brow_ref[...]                           # (H, W*Cout) f32

    if emit_stats:
        s = jnp.sum(acc, axis=0, keepdims=True)          # (1, W*Cout)
        ss = jnp.sum(acc * acc, axis=0, keepdims=True)   # (1, W*Cout)
        stats_ref[...] = jnp.concatenate([s, ss], axis=0).reshape(1, 2, WCout)

    if out_relu:
        acc = jnp.maximum(acc, 0.0)
    if out_sigmoid:
        acc = jax.nn.sigmoid(acc)
    y_ref[...] = acc.reshape(1, H, WCout).astype(y_ref.dtype)


def _banded_weights(w_hwio, W):
    """Fold the 3x3 kernel's kx taps + 'same' width padding into banded
    (Toeplitz) matmul weights of shape (3, W*Cin, W*Cout), one band per ky."""
    Cin, Cout = w_hwio.shape[2], w_hwio.shape[3]
    w = w_hwio.astype(jnp.float32)
    src = jnp.arange(W)[:, None]          # source column
    dst = jnp.arange(W)[None, :]          # destination column
    bands = []
    for ky in range(3):
        band = jnp.zeros((W, Cin, W, Cout), jnp.float32)
        for kx in range(3):
            mask = (src == dst + (kx - 1)).astype(jnp.float32)      # (W, W)
            band = band + mask[:, None, :, None] * w[ky, kx][None, :, None, :]
        bands.append(band.reshape(W * Cin, W * Cout))
    return jnp.stack(bands, axis=0)


# ----------------------------------------------------------------------------
# One conv_block: Conv2d(3x3, s1, p1) + bias [+ BatchNorm2d(train)] [+ ReLU]
# BN apply is deferred to the next consumer; trailing sigmoid is fused here
# when this is the final (no-BN) block.
# ----------------------------------------------------------------------------
def conv_block_pallas(x_flat, layer, cur_w, *, pending, fuse_sigmoid):
    N, H, WCin = x_flat.shape
    Cin, Cout = layer["w"].shape[2], layer["w"].shape[3]
    assert WCin == cur_w * Cin
    WCout = cur_w * Cout

    use_bn = layer["use_bn"]
    out_relu = layer["use_relu"] and not use_bn
    out_dtype = jnp.float32 if fuse_sigmoid else jnp.bfloat16

    wb = _banded_weights(layer["w"], cur_w).astype(jnp.bfloat16)
    brow = jnp.tile(layer["b"].astype(jnp.float32), cur_w).reshape(1, WCout)

    args = [x_flat, wb, brow]
    in_specs = [
        pl.BlockSpec((1, H, WCin), lambda n: (n, 0, 0)),
        pl.BlockSpec((3, WCin, WCout), lambda n: (0, 0, 0)),
        pl.BlockSpec((1, WCout), lambda n: (0, 0)),
    ]

    apply_in = pending is not None
    in_relu = False
    if apply_in:
        scale, shift, in_relu = pending
        args += [jnp.tile(scale.astype(jnp.float32), cur_w).reshape(1, WCin),
                 jnp.tile(shift.astype(jnp.float32), cur_w).reshape(1, WCin)]
        in_specs += [pl.BlockSpec((1, WCin), lambda n: (0, 0)),
                     pl.BlockSpec((1, WCin), lambda n: (0, 0))]

    if use_bn:
        out_shape = (jax.ShapeDtypeStruct((N, H, WCout), out_dtype),
                     jax.ShapeDtypeStruct((N, 2, WCout), jnp.float32))
        out_specs = (pl.BlockSpec((1, H, WCout), lambda n: (n, 0, 0)),
                     pl.BlockSpec((1, 2, WCout), lambda n: (n, 0, 0)))
    else:
        out_shape = jax.ShapeDtypeStruct((N, H, WCout), out_dtype)
        out_specs = pl.BlockSpec((1, H, WCout), lambda n: (n, 0, 0))

    kern = functools.partial(
        _conv3x3_kernel, H=H, WCout=WCout, apply_in=apply_in,
        in_relu=bool(in_relu), out_relu=out_relu,
        out_sigmoid=fuse_sigmoid, emit_stats=use_bn)

    result = pl.pallas_call(
        kern, grid=(N,), in_specs=in_specs, out_specs=out_specs,
        out_shape=out_shape, compiler_params=_compiler_params())(*args)

    if not use_bn:
        return result, None

    # --- BatchNorm finalize (tiny per-channel math, plain JAX) --------------
    y, stats = result
    tot = jnp.sum(stats, axis=0).reshape(2, cur_w, Cout).sum(axis=1)  # (2, Cout)
    count = float(N * H * cur_w)
    mean = tot[0] / count
    var = jnp.maximum(tot[1] / count - mean * mean, 0.0)   # biased (train mode)
    scale = layer["gamma"].astype(jnp.float32) * jax.lax.rsqrt(var + _BN_EPS)
    shift = layer["beta"].astype(jnp.float32) - mean * scale
    # Deferred: applied (with ReLU) inside the NEXT conv kernel.
    return y, (scale, shift, layer["use_relu"])


# ----------------------------------------------------------------------------
# Glue ops
# ----------------------------------------------------------------------------
def _upsample_flat(x_flat, cur_w, size):
    """nn.Upsample(size=size, mode='nearest') on the (N, H, W*C) layout.
    Exact-2x uses reshape/broadcast repeats; general sizes use the
    floor-index gather (src = floor(i * in / out))."""
    N, H, WC = x_flat.shape
    C = WC // cur_w
    Ho, Wo = size
    x4 = x_flat.reshape(N, H, cur_w, C)
    if Ho == 2 * H and Wo == 2 * cur_w:
        x4 = jnp.repeat(jnp.repeat(x4, 2, axis=1), 2, axis=2)
    else:
        rows = (jnp.arange(Ho) * H // Ho).astype(jnp.int32)
        cols = (jnp.arange(Wo) * cur_w // Wo).astype(jnp.int32)
        x4 = x4[:, rows][:, :, cols]
    return x4.reshape(N, Ho, Wo * C)


# ----------------------------------------------------------------------------
# Renderer: parameter construction mirroring the PyTorch __init__ loop
# ----------------------------------------------------------------------------
def _make_conv_block_params(key, cin, cout, use_bn, use_relu):
    kw, kb, kg, kbt = jax.random.split(key, 4)
    return {
        "type": "conv",
        "w": 0.1 * jax.random.normal(kw, (3, 3, cin, cout), jnp.float32),  # HWIO
        "b": 0.1 * jax.random.normal(kb, (cout,), jnp.float32),
        "gamma": jax.random.uniform(kg, (cout,), jnp.float32, 0.5, 1.5),
        "beta": 0.1 * jax.random.normal(kbt, (cout,), jnp.float32),
        "use_bn": use_bn,
        "use_relu": use_relu,
    }


def build_renderer_params(key, map_size, map_filters, n_filters,
                          n_final_out, n_final_res, batch_norm=True):
    layers = []
    ms = list(map_size)
    mf = map_filters
    nf = n_filters
    while ms[0] <= n_final_res:
        key, k1 = jax.random.split(key)
        layers.append(_make_conv_block_params(k1, mf, nf,
                                              use_bn=batch_norm, use_relu=True))
        if ms[0] == n_final_res:
            key, k2 = jax.random.split(key)
            layers.append(_make_conv_block_params(k2, nf, n_final_out,
                                                  use_bn=False, use_relu=False))
            break
        else:
            key, k2 = jax.random.split(key)
            layers.append(_make_conv_block_params(k2, nf, nf,
                                                  use_bn=batch_norm,
                                                  use_relu=True))
            ms = [2 * s for s in ms]
            layers.append({"type": "upsample", "size": tuple(ms)})
        mf = nf
        if nf >= 8:
            nf //= 2
    return layers


def renderer_forward(x_nchw, layers):
    """Forward pass. x: NCHW (like PyTorch). Returns NCHW, post-sigmoid."""
    N, C, H, W = x_nchw.shape
    conv_idxs = [i for i, l in enumerate(layers) if l["type"] == "conv"]
    if not conv_idxs:
        return jax.nn.sigmoid(x_nchw.astype(jnp.float32))
    last_conv = conv_idxs[-1]

    # NCHW -> lane-flat NHWC rows (N, H, W*C); bf16 between layers.
    x = jnp.transpose(x_nchw, (0, 2, 3, 1)).reshape(N, H, W * C)
    x = x.astype(jnp.bfloat16)
    cur_w = W
    pending = None   # deferred (scale, shift, relu) of the previous BN block
    for idx, layer in enumerate(layers):
        if layer["type"] == "upsample":
            # Nearest upsample commutes with the deferred per-channel
            # scale/shift/ReLU, so it can run on the pre-BN bf16 activations.
            Ho, Wo = layer["size"]
            x = _upsample_flat(x, cur_w, (Ho, Wo))
            cur_w = Wo
        else:
            fuse_sigmoid = (idx == last_conv) and not layer["use_bn"]
            x, pending = conv_block_pallas(x, layer, cur_w, pending=pending,
                                           fuse_sigmoid=fuse_sigmoid)

    Hf = x.shape[1]
    Cf = x.shape[2] // cur_w
    x = x.astype(jnp.float32).reshape(N, Hf, cur_w, Cf)
    if pending is not None:
        # Fallback (cannot occur with this module's builder, whose final block
        # is always batch_norm=False): apply deferred BN + act + sigmoid here.
        scale, shift, relu = pending
        x = x * scale + shift
        if relu:
            x = jnp.maximum(x, 0.0)
        x = jax.nn.sigmoid(x)
    return jnp.transpose(x, (0, 3, 1, 2))  # -> NCHW


# ----------------------------------------------------------------------------
# Pure-JAX f32 reference (same params / semantics) for the correctness check
# ----------------------------------------------------------------------------
def _ref_upsample(x_nhwc, size):
    N, H, W, C = x_nhwc.shape
    Ho, Wo = size
    rows = (jnp.arange(Ho) * H // Ho).astype(jnp.int32)
    cols = (jnp.arange(Wo) * W // Wo).astype(jnp.int32)
    return x_nhwc[:, rows][:, :, cols]


def _ref_conv_block(x, layer, apply_sigmoid):
    y = jax.lax.conv_general_dilated(
        x, layer["w"], window_strides=(1, 1), padding=((1, 1), (1, 1)),
        dimension_numbers=("NHWC", "HWIO", "NHWC"))
    y = y + layer["b"][None, None, None, :]
    if layer["use_bn"]:
        mean = jnp.mean(y, axis=(0, 1, 2), keepdims=True)
        var = jnp.mean((y - mean) ** 2, axis=(0, 1, 2), keepdims=True)
        y = (y - mean) * jax.lax.rsqrt(var + _BN_EPS)
        y = (y * layer["gamma"][None, None, None, :]
             + layer["beta"][None, None, None, :])
    if layer["use_relu"]:
        y = jnp.maximum(y, 0.0)
    if apply_sigmoid:
        y = jax.nn.sigmoid(y)
    return y


def renderer_forward_ref(x_nchw, layers):
    x = jnp.transpose(x_nchw, (0, 2, 3, 1)).astype(jnp.float32)
    if not layers:
        x = jax.nn.sigmoid(x)
    for idx, layer in enumerate(layers):
        if layer["type"] == "upsample":
            x = _ref_upsample(x, layer["size"])
        else:
            x = _ref_conv_block(x, layer, apply_sigmoid=(idx == len(layers) - 1))
    return jnp.transpose(x, (0, 3, 1, 2))


# ----------------------------------------------------------------------------
if __name__ == "__main__":
    key = jax.random.PRNGKey(0)
    k_params, k_x = jax.random.split(key)

    # Small Renderer config:
    #   map_size=[8,8], map_filters=4, n_filters=8, n_final_out=3, n_final_res=16
    # => conv(4->8)+BN+ReLU, conv(8->8)+BN+ReLU, upsample to 16x16,
    #    conv(8->4)+BN+ReLU, conv(4->3) [no BN, no act], sigmoid.
    map_size = [8, 8]
    layers = build_renderer_params(k_params, map_size, map_filters=4,
                                   n_filters=8, n_final_out=3, n_final_res=16)

    x = jax.random.normal(k_x, (2, 4, map_size[0], map_size[1]), jnp.float32)  # NCHW

    out = jax.block_until_ready(renderer_forward(x, layers))
    assert out.shape == (2, 3, 16, 16), out.shape

    ref = jax.block_until_ready(renderer_forward_ref(x, layers))
    err = float(jnp.max(jnp.abs(out.astype(jnp.float32) - ref)))
    # bf16 MXU operands + bf16 inter-layer (pre-BN) activations vs f32 ref:
    # expected discrepancy is O(1e-2) on the post-sigmoid output.
    assert err < 4e-2, f"max abs err vs f32 reference: {err}"
    print("KERNEL_OK")
</pallas_src>

<mosaic_0001>
module attributes {stable_mosaic.version = 11 : i64} {
  func.func @_conv3x3_kernel(%arg0: i32, %arg1: memref<1x8x32xbf16, #tpu.memory_space<vmem>>, %arg2: memref<3x32x64xbf16, #tpu.memory_space<vmem>>, %arg3: memref<1x64xf32, #tpu.memory_space<vmem>>, %arg4: memref<1x8x64xbf16, #tpu.memory_space<vmem>>, %arg5: memref<1x2x64xf32, #tpu.memory_space<vmem>>) attributes {dimension_semantics = [#tpu.dimension_semantics<parallel>], iteration_bounds = array<i64: 2>, scalar_prefetch = 0 : i64, scratch_operands = 0 : i64, tpu.core_type = #tpu.core_type<tc>, window_params = [{transform_indices = @transform_0, window_bounds = array<i64: 1, 8, 32>}, {pipeline_mode = #tpu.pipeline_mode<synchronous>, transform_indices = @transform_1, window_bounds = array<i64: 3, 32, 64>}, {pipeline_mode = #tpu.pipeline_mode<synchronous>, transform_indices = @transform_2, window_bounds = array<i64: 1, 64>}, {transform_indices = @transform_3, window_bounds = array<i64: 1, 8, 64>}, {transform_indices = @transform_4, window_bounds = array<i64: 1, 2, 64>}]} {
    %c0 = arith.constant 0 : index
    %c0_0 = arith.constant 0 : index
    %c0_1 = arith.constant 0 : index
    %0 = vector.load %arg1[%c0, %c0_0, %c0_1] : memref<1x8x32xbf16, #tpu.memory_space<vmem>>, vector<1x8x32xbf16>
    %1 = vector.shape_cast %0 : vector<1x8x32xbf16> to vector<8x32xbf16>
    %c0_2 = arith.constant 0 : index
    %c0_3 = arith.constant 0 : index
    %c0_4 = arith.constant 0 : index
    %2 = vector.load %arg2[%c0_2, %c0_3, %c0_4] : memref<3x32x64xbf16, #tpu.memory_space<vmem>>, vector<1x32x64xbf16>
    %3 = vector.shape_cast %2 : vector<1x32x64xbf16> to vector<32x64xbf16>
    %cst = arith.constant dense<0.000000e+00> : vector<8x64xf32>
    %4 = tpu.matmul %1, %3, %cst {dimension_numbers = #tpu.dot_dimension_numbers<[1], [0], [0], [1], [0, 0, 1, 1], [], []>} : vector<8x32xbf16>, vector<32x64xbf16>, vector<8x64xf32> -> vector<8x64xf32>
    %c1 = arith.constant 1 : index
    %c0_5 = arith.constant 0 : index
    %c0_6 = arith.constant 0 : index
    %5 = vector.load %arg2[%c1, %c0_5, %c0_6] : memref<3x32x64xbf16, #tpu.memory_space<vmem>>, vector<1x32x64xbf16>
    %6 = vector.shape_cast %5 : vector<1x32x64xbf16> to vector<32x64xbf16>
    %cst_7 = arith.constant dense<0.000000e+00> : vector<8x64xf32>
    %7 = tpu.matmul %1, %6, %cst_7 {dimension_numbers = #tpu.dot_dimension_numbers<[1], [0], [0], [1], [0, 0, 1, 1], [], []>} : vector<8x32xbf16>, vector<32x64xbf16>, vector<8x64xf32> -> vector<8x64xf32>
    %c2 = arith.constant 2 : index
    %c0_8 = arith.constant 0 : index
    %c0_9 = arith.constant 0 : index
    %8 = vector.load %arg2[%c2, %c0_8, %c0_9] : memref<3x32x64xbf16, #tpu.memory_space<vmem>>, vector<1x32x64xbf16>
    %9 = vector.shape_cast %8 : vector<1x32x64xbf16> to vector<32x64xbf16>
    %cst_10 = arith.constant dense<0.000000e+00> : vector<8x64xf32>
    %10 = tpu.matmul %1, %9, %cst_10 {dimension_numbers = #tpu.dot_dimension_numbers<[1], [0], [0], [1], [0, 0, 1, 1], [], []>} : vector<8x32xbf16>, vector<32x64xbf16>, vector<8x64xf32> -> vector<8x64xf32>
    %cst_11 = arith.constant 0.000000e+00 : f32
    %11 = vector.broadcast %cst_11 : f32 to vector<1x64xf32>
    %12 = vector.extract_strided_slice %4 {offsets = [0, 0], sizes = [7, 64], strides = [1, 1]} : vector<8x64xf32> to vector<7x64xf32>
    %13 = tpu.concatenate %11, %12 in 0 : vector<1x64xf32>, vector<7x64xf32> -> vector<8x64xf32>
    %14 = arith.addf %7, %13 : vector<8x64xf32>
    %15 = vector.extract_strided_slice %10 {offsets = [1, 0], sizes = [7, 64], strides = [1, 1]} : vector<8x64xf32> to vector<7x64xf32>
    %16 = tpu.concatenate %15, %11 in 0 : vector<7x64xf32>, vector<1x64xf32> -> vector<8x64xf32>
    %17 = arith.addf %14, %16 : vector<8x64xf32>
    %c0_12 = arith.constant 0 : index
    %c0_13 = arith.constant 0 : index
    %18 = vector.load %arg3[%c0_12, %c0_13] : memref<1x64xf32, #tpu.memory_space<vmem>>, vector<1x64xf32>
    %19 = vector.broadcast %18 : vector<1x64xf32> to vector<8x64xf32>
    %20 = arith.addf %17, %19 : vector<8x64xf32>
    %cst_14 = arith.constant dense<0.000000e+00> : vector<64xf32>
    %21 = vector.multi_reduction <add>, %20, %cst_14 [0] : vector<8x64xf32> to vector<64xf32>
    %22 = vector.shape_cast %21 : vector<64xf32> to vector<1x64xf32>
    %23 = arith.mulf %20, %20 : vector<8x64xf32>
    %cst_15 = arith.constant dense<0.000000e+00> : vector<64xf32>
    %24 = vector.multi_reduction <add>, %23, %cst_15 [0] : vector<8x64xf32> to vector<64xf32>
    %25 = vector.shape_cast %24 : vector<64xf32> to vector<1x64xf32>
    %26 = tpu.concatenate %22, %25 in 0 : vector<1x64xf32>, vector<1x64xf32> -> vector<2x64xf32>
    %27 = vector.shape_cast %26 : vector<2x64xf32> to vector<1x2x64xf32>
    %c0_16 = arith.constant 0 : index
    %c0_17 = arith.constant 0 : index
    %c0_18 = arith.constant 0 : index
    %28 = vector.load %arg5[%c0_16, %c0_17, %c0_18] : memref<1x2x64xf32, #tpu.memory_space<vmem>>, vector<1x2x64xf32>
    tpu.vector_store %arg5[%c0_16, %c0_17, %c0_18], %27 {strides = array<i32>} : memref<1x2x64xf32, #tpu.memory_space<vmem>>, vector<1x2x64xf32>,
    %29 = vector.shape_cast %20 : vector<8x64xf32> to vector<1x8x64xf32>
    %30 = arith.truncf %29 : vector<1x8x64xf32> to vector<1x8x64xbf16>
    %c0_19 = arith.constant 0 : index
    %c0_20 = arith.constant 0 : index
    %c0_21 = arith.constant 0 : index
    %31 = vector.load %arg4[%c0_19, %c0_20, %c0_21] : memref<1x8x64xbf16, #tpu.memory_space<vmem>>, vector<1x8x64xbf16>
    tpu.vector_store %arg4[%c0_19, %c0_20, %c0_21], %30 {strides = array<i32>} : memref<1x8x64xbf16, #tpu.memory_space<vmem>>, vector<1x8x64xbf16>,
    return
  }
  func.func @transform_0(%arg0: i32) -> (i32, i32, i32) {
    %c0_i32 = arith.constant 0 : i32
    %c0_i32_0 = arith.constant 0 : i32
    %c0_i32_1 = arith.constant 0 : i32
    return %arg0, %c0_i32, %c0_i32_0 : i32, i32, i32
  }
  func.func @transform_1(%arg0: i32) -> (i32, i32, i32) {
    %c0_i32 = arith.constant 0 : i32
    %c0_i32_0 = arith.constant 0 : i32
    %c0_i32_1 = arith.constant 0 : i32
    %c0_i32_2 = arith.constant 0 : i32
    return %c0_i32, %c0_i32_0, %c0_i32_1 : i32, i32, i32
  }
  func.func @transform_2(%arg0: i32) -> (i32, i32) {
    %c0_i32 = arith.constant 0 : i32
    %c0_i32_0 = arith.constant 0 : i32
    %c0_i32_1 = arith.constant 0 : i32
    return %c0_i32, %c0_i32_0 : i32, i32
  }
  func.func @transform_3(%arg0: i32) -> (i32, i32, i32) {
    %c0_i32 = arith.constant 0 : i32
    %c0_i32_0 = arith.constant 0 : i32
    %c0_i32_1 = arith.constant 0 : i32
    return %arg0, %c0_i32, %c0_i32_0 : i32, i32, i32
  }
  func.func @transform_4(%arg0: i32) -> (i32, i32, i32) {
    %c0_i32 = arith.constant 0 : i32
    %c0_i32_0 = arith.constant 0 : i32
    %c0_i32_1 = arith.constant 0 : i32
    return %arg0, %c0_i32, %c0_i32_0 : i32, i32, i32
  }
}

</mosaic_0001>

<bundles_post_ra>
// kernel: tpu_custom_call.1
= control target key start
LH: loop header
LB: loop body
LE: loop exit
PB: predicated region body
PF: predicated region fallthrough
CT: control target
= control target key end

     0   :  { %10 = vsyncpa [#allocation3], 0  ;;  %s1121_s0 = inlined_call_operand.hbm [shape: bf16[2,8,32], index: 0, kind: input, shape index: {}]   ;;  %s1122_s1 = inlined_call_operand.hbm [shape: bf16[3,32,64], index: 1, kind: input, shape index: {}]   ;;  %s1123_s2 = inlined_call_operand.vmem [shape: f32[1,64], index: 2, kind: input, shape index: {}]   ;;  %s1124_s3 = inlined_call_operand.hbm [shape: bf16[2,8,64], index: 3, kind: output, shape index: {0}]   ;;  %s1125_s4 = inlined_call_operand.hbm [shape: f32[2,2,64], index: 4, kind: output, shape index: {1}]  }
   0x1   :  { %12 = vsyncpa [#allocation3 + $0x1], 0 }
   0x2   :  { %13 = vsyncpa [#allocation6], 0 }
   0x3   :  { %14 = vsyncpa [#allocation4], 0 }
   0x4   :  { %16 = vsyncpa [#allocation4 + $0x1], 0 }
   0x5   :  { %17 = vsyncpa [#allocation9], 0 }
   0x6   :  { %19 = vsyncpa [#allocation9 + $0x1], 0  ;;  %s919_s15 = smov 0   ;;  %s921_s16 = smov 0  }
   0x7   :  { %s923_s17 = smov 0   ;;  %s925_s18 = smov 0  }
   0x8 LB: > { %s940_s19 = sadd.s32 4294967295, %s884_s18   ;;  %s600_s20 = sadd.s32 4294967294, %s884_s18   ;;  %s884_s18 = sphi %s925_s18, %s1147_s18   ;;  %s880_s17 = sphi %s923_s17, %s1146_s17   ;;  %s876_s16 = sphi %s921_s16, %s1145_s16   ;;  %s872_s15 = sphi %s919_s15, %s1144_s15  }
   0x9   : > { %p45_p0 = scmp.ne.s32.totalorder %s876_s16, %s872_s15  ;;  %p1126_p1 = scmp.eq.s32.totalorder %s940_s19, 0 }
   0xa   : > { %p117_p3 = scmp.eq.s32.totalorder %s600_s20, 1  ;;  %p601_p5 = scmp.ge.s32.totalorder %s884_s18, 1 }
   0xb   : > { %p949_p4 = por %p1126_p1, %p45_p0  ;;  %p150_p7 = scmp.lt.s32.totalorder %s884_s18, 3 }
   0xc   : > { %p954_p6 = por %p117_p3, %p45_p0  ;;  %s886_s24 = smov [#allocation5]  }
   0xd   : > { %s1130_s21 = scalar_select %p949_p4, 1, 0 }
   0xe   : > { %s1131_s22 = scalar_select %p954_p6, 1, 0 }
   0xf   : > { %p959_p8 = pnand %p601_p5, %p150_p7  ;;  %s162_s25 = sshll.u32 %s886_s24, 4  ;;  %s163_s25 = int_to_ptr.vmem [resolvable:$true] %s162_s25 }
  0x10   : > { %s973_s27 = sadd.s32 1, %s884_s18   ;;  %s32_s28 = sadd.s32 1, %s880_s17 }
  0x11   : > { %s1132_s23 = scalar_select %p959_p8, 1, 0 }
  0x12   : > { %p670_p9 = pneg %p959_p8  ;;  %s29_s29 = ssub.s32 %s884_s18, %s973_s27 }
  0x13   : > { %s743_s30 = scalar_lea.vmem %s163_s25, 768  ;;  %p751_p5 = scmp.lt.s32.totalorder %s163_s25, %s163_s25 }
  0x14   : > { %p968_p11 = pnand %p670_p9, %p1126_p1  ;;  %p744_p13 = scmp.ne.s32.totalorder %s163_s25, %s743_s30 }
  0x15   : > { %p752_p7 = scmp.lt.s32.totalorder %s743_s30, %s743_s30 }
  0x16   : > { %p734_p12 = pneg %p968_p11 }
  0x17   : > { %p753_p10 = por %p752_p7, %p751_p5 }
  0x18   : > { %p746_p0 = pnand %p744_p13, %p734_p12 }
  0x1a   : > { %p747_p3 = pneg %p746_p0 }
  0x1c   : > { %p754_p2 = pnand %p753_p10, %p747_p3 }
  0x1e   : > { %757 = shalt.err (!%p754_p2)
}
  0x1f   : > { %s887_s5 = smov 64   ;;  %s888_s6 = smov 4  }
  0x20   : > { %673 = dma.hbm_to_vmem [thread:$0]  (!%p968_p11), %s1122_s1, 768, %s163_s25, [#allocation6], %s887_s5, %s887_s5, %s888_s6  }
  0x21   : > { %p30_p9 = scmp.eq.s32.totalorder %s29_s29, 0  ;;  %p39_p12 = scmp.ne.s32.totalorder %s880_s17, %s876_s16 }
  0x22   : > { %p40_p10 = scmp.eq.s32.totalorder %s884_s18, 0  ;;  %p686_p2 = scmp.lt.s32.totalorder %s884_s18, 2 }
  0x23   : > { %s990_s9 = scalar_select %p30_p9, %s880_s17, %s32_s28  }
  0x24   : > { %p41_p13 = por %p40_p10, %p39_p12  ;;  %p1134_p0 = scmp.eq.s32.totalorder %s940_s19, 1 }
  0x25   : > { %s179_s11 = sand.u32 1, %s880_s17   ;;  %s605_s12 = sshll.u32 %s884_s18, 6 }
  0x26   : > { %p994_p3 = por %p1134_p0, %p39_p12  ;;  %s604_s13 = sshll.u32 %s179_s11, 2 }
  0x27   : > { %s1003_s24 = scalar_lea.hbm %s1121_s0, %s605_s12  ;;  %s183_s25 = scalar_lea.vmem [#allocation2], %s604_s13 }
  0x28   : > { %s1135_s10 = scalar_select %p994_p3, 1, 0 }
  0x29   : > { %s190_s26 = sshll.u32 %s183_s25, 4  ;;  %p1005_p11 = pnand %p686_p2, %p41_p13  ;;  %s191_s26 = int_to_ptr.vmem [resolvable:$true] %s190_s26 }
  0x2a   : > { %s180_s29 = scalar_lea.sflag [#allocation3], %s179_s11  ;;  %s758_s30 = scalar_lea.hbm %s1003_s24, 64 }
  0x2b   : > { %p759_p5 = scmp.ne.s32.totalorder %s1003_s24, %s758_s30  ;;  %p760_p7 = pneg %p1005_p11 }
  0x2c   : > { %s763_s7 = scalar_lea.hbm %s1121_s0, 128  ;;  %p764_p10 = scmp.lt.s32.totalorder %s1003_s24, %s1121_s0 }
  0x2d   : > { %p761_p9 = pnand %p760_p7, %p759_p5  ;;  %p765_p2 = scmp.lt.s32.totalorder %s763_s7, %s758_s30 }
  0x2f   : > { %p762_p12 = pneg %p761_p9  ;;  %p766_p13 = por %p765_p2, %p764_p10 }
  0x31   : > { %p767_p0 = pnand %p766_p13, %p762_p12 }
  0x33   : > { %770 = shalt.err (!%p767_p0)
}
  0x34   : > { %s771_s13 = scalar_lea.vmem %s191_s26, 64  ;;  %s889_s11 = smov [#allocation2]  }
  0x35   : > { %p772_p1 = scmp.ne.s32.totalorder %s191_s26, %s771_s13  ;;  %s776_s14 = sshll.u32 %s889_s11, 4  ;;  %s777_s14 = int_to_ptr.vmem [resolvable:$false] %s776_s14 }
  0x36   : > { %s778_s20 = scalar_lea.vmem %s777_s14, 128  ;;  %p779_p5 = scmp.lt.s32.totalorder %s191_s26, %s777_s14 }
  0x37   : > { %p774_p6 = pnand %p772_p1, %p760_p7  ;;  %p780_p9 = scmp.lt.s32.totalorder %s778_s20, %s771_s13 }
  0x39   : > { %p775_p3 = pneg %p774_p6  ;;  %p781_p4 = por %p780_p9, %p779_p5 }
  0x3b   : > { %p782_p8 = pnand %p781_p4, %p775_p3 }
  0x3d   : > { %785 = shalt.err (!%p782_p8)
}
  0x3e   : > { %677 = dma.hbm_to_vmem [thread:$0]  (!%p1005_p11), %s1003_s24, 64, %s191_s26, %s180_s29  }
  0x3f   : > { %p1137_p12 = scmp.ne.s32.totalorder %s1132_s23, 0 }
  0x40   : > { %s1026_s25 = sand.u32 (!%p1137_p12), 1, %s876_s16   ;;  %p1138_p1 = scmp.ne.s32.totalorder (!%p1137_p12), %s1130_s21, 0 }
  0x41   : > { %199 = sbr.rel (%p1137_p12) target bundleno = 331 (0x14b), region = 32  ;;  %s607_s30 = sshll.u32 (!%p1137_p12), %s1026_s25, 2 }
  0x42   : > { %s202_s5 = scalar_lea.sflag (!%p1137_p12), [#allocation3], %s1026_s25  ;;  %s205_s6 = scalar_lea.vmem (!%p1137_p12), [#allocation2], %s607_s30 }
  0x46   : > { %855 = dma.done.wait (%p1138_p1), %s202_s5, 64  }
  0x47   : > { %857 = vsyncadd (%p1138_p1), %s202_s5, 4294967232  ;;  %p1139_p4 = scmp.eq.s32.totalorder %s940_s19, 0 }
  0x49   : > { %859 = dma.done.wait (%p1139_p4), [#allocation6], 768   ;;  %p1140_p6 = pmov %p1139_p4 }
  0x4a   : > { %v890_v0 = vmov 0.0   ;;  %vm891_vm0 = vmmov 0   ;;  %v726_v1 = vld [vmem:[#allocation5 + $0x8] sm:$0xff]   ;;  %v728_v3 = vld [vmem:[#allocation5] sm:$0xff]   ;;  %v240_v5 = vld [vmem:[%s205_s6] sm:$0xf] }
  0x4b   : > { %861 = vsyncadd (%p1140_p6), [#allocation6], 4294966528  ;;  %636 = vmatprep.subr.bf16.mxu0 %v890_v0  ;;  %644 = vmatprep.subr.bf16.mxu1 %v890_v0  ;;  %v727_v2 = vld [vmem:[#allocation5 + $0x28] sm:$0xff]   ;;  %v729_v4 = vld [vmem:[#allocation5 + $0x20] sm:$0xff]   ;;  %vm257_vm1 = vcmask 261120   ;;  %vm423_vm2 = vcmask 1046528  }
  0x4c   : > { %640 = vmatprep.mubr.msk.bf16.mxu0 %vm891_vm0, %v890_v0  ;;  %648 = vmatprep.mubr.msk.bf16.mxu1 %vm891_vm0, %v890_v0  ;;  %v730_v6 = vld [vmem:[#allocation5 + $0x18] sm:$0xff]   ;;  %v731_v7 = vld [vmem:[#allocation5 + $0x10] sm:$0xff]   ;;  %vm366_vm3 = vcmask 1040384   ;;  %vm434_vm4 = vcmask 523264   ;;  %s623_s24 = sshll.u32 %s940_s19, 6  ;;  %s231_s26 = scalar_lea.vmem [#allocation7], %s607_s30 }
  0x4d   : > { %637 = vmatpush3.bf16.msra.mxu0 %v726_v1  ;;  %645 = vmatpush3.bf16.msra.mxu1 %v727_v2  ;;  %v620_v22 = vld [vmem:[%s1123_s2] ss:$0 sm:$0xff]  ;;  %s475_s28 = sshll.u32 %s231_s26, 4  ;;  %vm454_vm5 = vcmask 519168   ;;  %s1053_s8 = scalar_lea.hbm %s1124_s3, %s623_s24  ;;  %s1055_s28 = int_to_ptr.vmem [resolvable:$true] %s475_s28 }
  0x4e   : > { %638 = vmatprep.subr.bf16.mxu0 %v890_v0  ;;  %646 = vmatprep.subr.bf16.mxu1 %v890_v0  ;;  %s457_s12 = scalar_lea.sflag [#allocation4], %s1026_s25  ;;  %s786_s13 = scalar_lea.vmem %s1055_s28, 64 }
  0x4f   : > { %p787_p8 = scmp.ne.s32.totalorder %s1055_s28, %s786_s13  ;;  %p1141_p3 = scmp.ne.s32.totalorder %s1135_s10, 0 }
  0x50   : > { %s892_s11 = smov [#allocation7]  }
  0x51   : > { %639 = vmatpush3.bf16.msra.mxu0 %v728_v3  ;;  %647 = vmatpush3.bf16.msra.mxu1 %v729_v4  ;;  %p788_p11 = pnand %p787_p8, %p1141_p3  ;;  %s790_s14 = sshll.u32 %s892_s11, 4  ;;  %s791_s14 = int_to_ptr.vmem [resolvable:$false] %s790_s14 }
  0x52   : > { %652 = vmatprep.subr.bf16.mxu0 %v890_v0  ;;  %s792_s20 = scalar_lea.vmem %s791_s14, 128  ;;  %p793_p10 = scmp.lt.s32.totalorder %s1055_s28, %s791_s14 }
  0x53   : > { %p789_p7 = pneg %p788_p11  ;;  %p794_p2 = scmp.lt.s32.totalorder %s792_s20, %s786_s13 }
  0x54   : > { %641 = vmatmul.mubr.msk.bf16.vlgmr.msra.gmra.mxu0 %vm257_vm1, %v240_v5  ;;  %649 = vmatmul.mubr.msk.bf16.vlgmr.msra.gmra.mxu1 %vm257_vm1, %v240_v5 }
  0x55   : > { %653 = vmatpush3.bf16.msra.mxu0 %v730_v6  ;;  %656 = vmatprep.mubr.msk.bf16.mxu0 %vm891_vm0, %v890_v0  ;;  %p795_p13 = por %p794_p2, %p793_p10 }
  0x56   : > { %654 = vmatprep.subr.bf16.mxu0 %v890_v0 }
  0x57   : > { %p796_p0 = pnand %p795_p13, %p789_p7 }
  0x59   : > { %655 = vmatpush3.bf16.msra.mxu0 %v731_v7 }
  0x5c   : > { %657 = vmatmul.mubr.msk.bf16.vlgmr.msra.gmra.mxu0 %vm257_vm1, %v240_v5 }
 0x114   : > { %v295_v8 = vpop.f32.mrf.mxu0  ;;  %v357_v9 = vpop.f32.mrf.mxu1 }
 0x115   : > { %v364_v12 = vrot.slane %v295_v8, 7  ;;  %v421_v13 = vrot.slane %v357_v9, 1 }
 0x116   : > { %v642_v10 = vpop.f32.mrf.mxu0  ;;  %v650_v11 = vpop.f32.mrf.mxu1 }
 0x117   : > { %v424_v18 = vsel %vm423_vm2, %v421_v13, 0.0  ;;  %v367_v19 = vsel %vm366_vm3, 0.0, %v364_v12 }
 0x118   : > { %v298_v14 = vpop.f32.mrf.mxu0  ;;  %v360_v15 = vpop.f32.mrf.mxu1 }
 0x11a   : > { %v643_v16 = vpop.f32.mrf.mxu0  ;;  %v651_v17 = vpop.f32.mrf.mxu1 }
 0x11c   : > { %v414_v20 = vpop.f32.mrf.mxu0 }
 0x11d   : > { %v415_v21 = vadd.f32 %v414_v20, %v367_v19 }
 0x11e   : > { %v658_v23 = vpop.f32.mrf.mxu0 }
 0x11f   : > { %v425_v24 = vadd.f32 %v424_v18, %v415_v21 }
 0x120   : > { %v417_v25 = vpop.f32.mrf.mxu0 }
 0x121   : > { %v433_v26 = vadd.f32 %v620_v22, %v425_v24 }
 0x122   : > { %v659_v27 = vpop.f32.mrf.mxu0 }
 0x123   : > { %v435_v28 = vsel %vm434_vm4, %v433_v26, 0.0  ;;  %v442_v29 = vmul.f32 %v433_v26, %v433_v26  ;;  %v453_v30 = vpack.c.bf16 %v433_v26, %v433_v26 }
 0x124   : > { %v436_v31 = vrot.slane %v435_v28, 4 }
 0x125   : > { %v443_v32 = vsel %vm434_vm4, %v442_v29, 0.0  ;;  %455 = vst.msk [vmem:[%s231_s26] sm:$0xf] %vm454_vm5, %v453_v30 }
 0x126   : > { %v437_v33 = vadd.f32 %v436_v31, %v435_v28  ;;  %v444_v34 = vrot.slane %v443_v32, 4 }
 0x127   : > { %799 = shalt.err (!%p796_p0)
}
 0x128   : > { %s800_s30 = scalar_lea.hbm %s1053_s8, 64  ;;  %s804_s21 = scalar_lea.hbm %s1124_s3, 128 }
 0x129   : > { %p801_p5 = scmp.ne.s32.totalorder %s1053_s8, %s800_s30  ;;  %p805_p1 = scmp.lt.s32.totalorder %s1053_s8, %s1124_s3 }
 0x12a   : > { %p806_p4 = scmp.lt.s32.totalorder %s804_s21, %s800_s30 }
 0x12b   : > { %p802_p9 = pnand %p801_p5, %p1141_p3 }
 0x12c   : > { %p807_p6 = por %p806_p4, %p805_p1 }
 0x12d   : > { %p803_p12 = pneg %p802_p9 }
 0x12f   : > { %p808_p8 = pnand %p807_p6, %p803_p12 }
 0x131   : > { %811 = shalt.err (!%p808_p8)
}
 0x132   : > { %666 = dma.vmem_to_hbm [thread:$0]  (%p1141_p3), %s1055_s28, 64, %s1053_s8, %s457_s12   ;;  %v438_v35 = vrot.slane %v437_v33, 2  ;;  %v445_v36 = vadd.f32 %v444_v34, %v443_v32  ;;  %vm451_vm6 = vcmask 517120  }
 0x133   : > { %s610_s26 = sshll.u32 %s1026_s25, 1  ;;  %s624_s29 = sshll.u32 %s940_s19, 5 }
 0x134   : > { %v439_v37 = vadd.f32 %v438_v35, %v437_v33  ;;  %v446_v38 = vrot.slane %v445_v36, 2  ;;  %s238_s7 = scalar_lea.vmem [#allocation8], %s610_s26  ;;  %s1083_s28 = scalar_lea.hbm %s1125_s4, %s624_s29 }
 0x135   : > { %s488_s13 = sshll.u32 %s238_s7, 4  ;;  %s462_s8 = scalar_lea.sflag [#allocation9], %s1026_s25  ;;  %s489_s13 = int_to_ptr.vmem [resolvable:$true] %s488_s13 }
 0x136   : > { %v440_v39 = vrot.slane %v439_v37, 1  ;;  %v447_v40 = vadd.f32 %v446_v38, %v445_v36  ;;  %s812_s12 = scalar_lea.vmem %s489_s13, 32  ;;  %s893_s19 = smov [#allocation8]  }
 0x137   : > { %p813_p11 = scmp.ne.s32.totalorder %s489_s13, %s812_s12  ;;  %s816_s20 = sshll.u32 %s893_s19, 4  ;;  %s817_s20 = int_to_ptr.vmem [resolvable:$false] %s816_s20 }
 0x138   : > { %v448_v41 = vrot.slane %v447_v40, 1  ;;  %v441_v42 = vadd.f32 %v440_v39, %v439_v37  ;;  %s818_s30 = scalar_lea.vmem %s817_s20, 64  ;;  %p819_p2 = scmp.lt.s32.totalorder %s489_s13, %s817_s20 }
 0x139   : > { %p814_p7 = pnand %p813_p11, %p1141_p3  ;;  %p820_p13 = scmp.lt.s32.totalorder %s818_s30, %s812_s12 }
 0x13a   : > { %v449_v43 = vadd.f32 %v448_v41, %v447_v40 }
 0x13b   : > { %p815_p10 = pneg %p814_p7  ;;  %p821_p0 = por %p820_p13, %p819_p2 }
 0x13c   : > { %v450_v44 = vsel %vm366_vm3, %v441_v42, %v449_v43 }
 0x13d   : > { %452 = vst.msk [vmem:[%s238_s7] sm:$0x3] %vm451_vm6, %v450_v44  ;;  %p822_p5 = pnand %p821_p0, %p815_p10 }
 0x13f   : > { %825 = shalt.err (!%p822_p5)
}
 0x140   : > { %s826_s5 = scalar_lea.hbm %s1083_s28, 32  ;;  %s830_s21 = scalar_lea.hbm %s1125_s4, 64 }
 0x141   : > { %p827_p9 = scmp.ne.s32.totalorder %s1083_s28, %s826_s5  ;;  %p831_p4 = scmp.lt.s32.totalorder %s1083_s28, %s1125_s4 }
 0x142   : > { %p832_p6 = scmp.lt.s32.totalorder %s830_s21, %s826_s5 }
 0x143   : > { %p828_p12 = pnand %p827_p9, %p1141_p3 }
 0x144   : > { %p833_p8 = por %p832_p6, %p831_p4 }
 0x145   : > { %p829_p1 = pneg %p828_p12 }
 0x147   : > { %p834_p11 = pnand %p833_p8, %p829_p1 }
 0x149   : > { %837 = shalt.err (!%p834_p11)
}
 0x14a   : > { %667 = dma.vmem_to_hbm [thread:$0]  (%p1141_p3), %s489_s13, 32, %s1083_s28, %s462_s8  }
 0x14b PF: > { %s500_s26 = sand.u32 1, %s872_s15   ;;  %p1142_p7 = scmp.ne.s32.totalorder %s1131_s22, 0 }
 0x14c   : > { %p1143_p10 = scmp.ge.s32.totalorder %s884_s18, 2  ;;  %s501_s29 = scalar_lea.sflag [#allocation4], %s500_s26 }
 0x14e   : > { %p679_p2 = pnand %p1143_p10, %p1142_p7 }
 0x150   : > { %p680_p13 = pneg %p679_p2 }
 0x152   : > { %863 = dma.done.wait (%p680_p13), %s501_s29, 64  }
 0x153   : > { %865 = vsyncadd (%p680_p13), %s501_s29, 4294967232  ;;  %s510_s7 = scalar_lea.sflag [#allocation9], %s500_s26 }
 0x154   : > { %867 = dma.done.wait (%p680_p13), %s510_s7, 32  }
 0x155   : > { %869 = vsyncadd (%p680_p13), %s510_s7, 4294967264  ;;  %p22_p3 = scmp.ge.s32.totalorder %s973_s27, 4   ;;  %s1144_s15 = smov %s876_s16 }
 0x156   : > { %s1145_s16 = smov %s880_s17  ;;  %s1146_s17 = smov %s990_s9 }
 0x157   : > { %s1147_s18 = smov %s973_s27  ;;  %24 = sbr.rel (!%p22_p3) target bundleno = 8 (0x8), region = 100 }
 0x15c   :  { %515 = vsyncpa [#allocation3], 1 }
 0x15d   :  { %517 = vsyncpa [#allocation3 + $0x1], 1 }
 0x15e   :  { %518 = vsyncpa [#allocation6], 1 }
 0x15f   :  { %519 = vsyncpa [#allocation4], 1 }
 0x160   :  { %521 = vsyncpa [#allocation4 + $0x1], 1 }
 0x161   :  { %522 = vsyncpa [#allocation9], 1 }
 0x162   :  { %524 = vsyncpa [#allocation9 + $0x1], 1 }

</bundles_post_ra>
